<compile_context>
chip_gen: v7x
topology: tpu7x:2x2x1
jax: 0.10.0
libtpu: 0.0.40
codegen_flags: <defaults>
</compile_context>

<pallas_src>
import functools

import jax
import jax.numpy as jnp
from jax.experimental import pallas as pl
from jax.experimental.pallas import tpu as pltpu


# ---------------------------------------------------------------------------
# Glue: dense normalized adjacency (PyG GCNConv's gcn_norm with self-loops)
# ---------------------------------------------------------------------------
def build_norm_adj(edge_index, edge_weight, num_nodes):
    src = edge_index[0]
    dst = edge_index[1]
    num_edges = src.shape[0]
    if edge_weight is None:
        edge_weight = jnp.ones((num_edges,), dtype=jnp.float32)
    edge_weight = edge_weight.astype(jnp.float32)

    loop = jnp.arange(num_nodes, dtype=src.dtype)
    src_full = jnp.concatenate([src, loop])
    dst_full = jnp.concatenate([dst, loop])
    ew_full = jnp.concatenate([edge_weight, jnp.ones((num_nodes,), jnp.float32)])

    deg = jnp.zeros((num_nodes,), jnp.float32).at[dst_full].add(ew_full)
    deg_inv_sqrt = jnp.where(deg > 0, 1.0 / jnp.sqrt(deg), 0.0)
    norm = deg_inv_sqrt[dst_full] * ew_full * deg_inv_sqrt[src_full]

    # A_hat[target, source]
    a = jnp.zeros((num_nodes, num_nodes), jnp.float32).at[dst_full, src_full].add(norm)
    return a


def _round_up(x, m):
    return (x + m - 1) // m * m


def _pad2(arr, rows, cols):
    pr = rows - arr.shape[0]
    pc = cols - arr.shape[1]
    if pr or pc:
        arr = jnp.pad(arr, ((0, pr), (0, pc)))
    return arr


def _pick_tile(n_pad):
    for t in (512, 256, 128):
        if n_pad % t == 0:
            return t
    return n_pad  # unreachable: n_pad is a multiple of 128


def _elu(h):
    # ELU (alpha=1).  exp(x)-1 kept instead of expm1 so the Mosaic lowering
    # path is guaranteed; the ~1e-7 f32 abs error is far below bf16 matmul
    # noise elsewhere in the kernel.
    # TODO(synk): switch to jnp.expm1 once its Mosaic lowering is confirmed.
    return jnp.where(h > 0, h, jnp.exp(jnp.minimum(h, 0.0)) - 1.0)


# ---------------------------------------------------------------------------
# Kernel A: fully-fused 2-layer GCN (everything VMEM resident, small graphs)
# ---------------------------------------------------------------------------
def gcn_fused_kernel(a_ref, x_ref, w1_ref, b1_ref, w2_ref, b2_ref, out_ref):
    a = a_ref[...]                                                   # bf16 [Np,Np]

    xw1 = jnp.dot(x_ref[...], w1_ref[...], preferred_element_type=jnp.float32)
    h1 = jnp.dot(a, xw1.astype(jnp.bfloat16),
                 preferred_element_type=jnp.float32) + b1_ref[...]   # f32
    h1 = _elu(h1)

    xw2 = jnp.dot(h1.astype(jnp.bfloat16), w2_ref[...],
                  preferred_element_type=jnp.float32)
    out_ref[...] = jnp.dot(a, xw2.astype(jnp.bfloat16),
                           preferred_element_type=jnp.float32) + b2_ref[...]


# ---------------------------------------------------------------------------
# Kernel B: feature projection  Z = X @ W  (row-tiled)
# ---------------------------------------------------------------------------
def xw_kernel(x_ref, w_ref, o_ref):
    o_ref[...] = jnp.dot(x_ref[...], w_ref[...],
                         preferred_element_type=jnp.float32).astype(o_ref.dtype)


def _xw_tiled(x, w, out_dtype):
    n_pad, f_pad = x.shape
    o_pad = w.shape[1]
    tm = _pick_tile(n_pad)
    return pl.pallas_call(
        xw_kernel,
        out_shape=jax.ShapeDtypeStruct((n_pad, o_pad), out_dtype),
        grid_spec=pltpu.PrefetchScalarGridSpec(
            num_scalar_prefetch=0,
            grid=(n_pad // tm,),
            in_specs=[
                pl.BlockSpec((tm, f_pad), lambda i: (i, 0)),
                pl.BlockSpec((f_pad, o_pad), lambda i: (0, 0)),
            ],
            out_specs=pl.BlockSpec((tm, o_pad), lambda i: (i, 0)),
        ),
        compiler_params=pltpu.CompilerParams(
            dimension_semantics=("parallel",)),
        cost_estimate=pl.CostEstimate(
            flops=int(2 * n_pad * f_pad * o_pad),
            transcendentals=0,
            bytes_accessed=int(2 * n_pad * f_pad + 2 * f_pad * o_pad
                               + jnp.dtype(out_dtype).itemsize * n_pad * o_pad),
        ),
    )(x, w)


# ---------------------------------------------------------------------------
# Kernel C: aggregation  out = [ELU](A_hat @ Z + b) [@ W_next]
#   grid = (rows of A_hat, source-node tiles)  ->  ("parallel", "arbitrary")
# ---------------------------------------------------------------------------
def gcn_agg_kernel(a_ref, z_ref, b_ref, out_ref, acc_ref, *, apply_elu):
    k = pl.program_id(1)

    @pl.when(k == 0)
    def _():
        acc_ref[...] = jnp.zeros_like(acc_ref)

    acc_ref[...] += jnp.dot(a_ref[...], z_ref[...],
                            preferred_element_type=jnp.float32)

    @pl.when(k == pl.num_programs(1) - 1)
    def _():
        h = acc_ref[...] + b_ref[...]
        if apply_elu:
            h = _elu(h)
        out_ref[...] = h.astype(out_ref.dtype)


def gcn_agg_project_kernel(a_ref, z_ref, b_ref, wn_ref, out_ref, acc_ref, *,
                           apply_elu):
    k = pl.program_id(1)

    @pl.when(k == 0)
    def _():
        acc_ref[...] = jnp.zeros_like(acc_ref)

    acc_ref[...] += jnp.dot(a_ref[...], z_ref[...],
                            preferred_element_type=jnp.float32)

    @pl.when(k == pl.num_programs(1) - 1)
    def _():
        h = acc_ref[...] + b_ref[...]
        if apply_elu:
            h = _elu(h)
        # Fused projection with the *next* layer's weight: avoids writing h1
        # to HBM and re-reading it for the next GCN layer.
        out_ref[...] = jnp.dot(h.astype(jnp.bfloat16), wn_ref[...],
                               preferred_element_type=jnp.float32
                               ).astype(out_ref.dtype)


def _agg_tiled(a, z, b, w_next, *, apply_elu, out_dtype):
    n_pad = a.shape[0]
    d = z.shape[1]
    o_pad = d if w_next is None else w_next.shape[1]
    tm = tk = _pick_tile(n_pad)
    grid = (n_pad // tm, n_pad // tk)
    out_bytes = jnp.dtype(out_dtype).itemsize

    in_specs = [
        pl.BlockSpec((tm, tk), lambda i, k: (i, k)),     # A_hat tile
        pl.BlockSpec((tk, d), lambda i, k: (k, 0)),      # Z source rows
        pl.BlockSpec((1, d), lambda i, k: (0, 0)),       # bias
    ]
    args = [a, z, b]
    if w_next is None:
        kernel = functools.partial(gcn_agg_kernel, apply_elu=apply_elu)
        proj_flops = 0
        wn_bytes = 0
    else:
        kernel = functools.partial(gcn_agg_project_kernel, apply_elu=apply_elu)
        in_specs.append(pl.BlockSpec((d, o_pad), lambda i, k: (0, 0)))
        args.append(w_next)
        proj_flops = 2 * n_pad * d * o_pad
        wn_bytes = 2 * d * o_pad

    # double-buffered blocks + f32 accumulator + headroom
    needed = (2 * (tm * tk * 2 + tk * d * 2 + d * 4 + wn_bytes
                   + tm * o_pad * out_bytes)
              + tm * d * 4 + (4 << 20))
    vmem_limit = int(min(max(needed, 32 << 20), 96 << 20))

    return pl.pallas_call(
        kernel,
        out_shape=jax.ShapeDtypeStruct((n_pad, o_pad), out_dtype),
        grid_spec=pltpu.PrefetchScalarGridSpec(
            num_scalar_prefetch=0,
            grid=grid,
            in_specs=in_specs,
            out_specs=pl.BlockSpec((tm, o_pad), lambda i, k: (i, 0)),
            scratch_shapes=[pltpu.VMEM((tm, d), jnp.float32)],
        ),
        compiler_params=pltpu.CompilerParams(
            dimension_semantics=("parallel", "arbitrary"),
            vmem_limit_bytes=vmem_limit,
        ),
        cost_estimate=pl.CostEstimate(
            flops=int(2 * n_pad * n_pad * d + proj_flops),
            transcendentals=int(n_pad * d if apply_elu else 0),
            bytes_accessed=int(2 * n_pad * n_pad + 2 * n_pad * d + wn_bytes
                               + out_bytes * n_pad * o_pad),
        ),
    )(*args)


# ---------------------------------------------------------------------------
# Forward wrapper
# ---------------------------------------------------------------------------
@functools.partial(jax.jit, static_argnames=("force_tiled",))
def gcn_forward(x, edge_index, params, edge_weight=None, force_tiled=False):
    """x: [N, in_feats] float, edge_index: [2, E] int32."""
    w1, b1, w2, b2 = params
    n, in_feats = x.shape
    h_feats = w1.shape[1]
    out_feats = w2.shape[1]

    a = build_norm_adj(edge_index, edge_weight, n)

    # lane-dense padding (multiples of 128 on every contraction / lane dim)
    n_pad = _round_up(max(n, 8), 128)
    f_pad = _round_up(in_feats, 128)
    h_pad = _round_up(h_feats, 128)
    o_pad = _round_up(out_feats, 128)

    a_p = _pad2(a, n_pad, n_pad).astype(jnp.bfloat16)
    x_p = _pad2(x.astype(jnp.float32), n_pad, f_pad).astype(jnp.bfloat16)
    w1_p = _pad2(w1.astype(jnp.float32), f_pad, h_pad).astype(jnp.bfloat16)
    b1_p = _pad2(b1.reshape(1, -1).astype(jnp.float32), 1, h_pad)
    w2_p = _pad2(w2.astype(jnp.float32), h_pad, o_pad).astype(jnp.bfloat16)
    b2_p = _pad2(b2.reshape(1, -1).astype(jnp.float32), 1, o_pad)

    # rough VMEM footprint of the fully-fused path (bf16 A/X/W + f32 temps)
    fused_bytes = (2 * n_pad * n_pad + 2 * n_pad * f_pad
                   + 2 * (f_pad * h_pad + h_pad * o_pad)
                   + 8 * n_pad * h_pad + 8 * n_pad * o_pad)

    if not force_tiled and fused_bytes <= (20 << 20):
        vmem = pl.BlockSpec(memory_space=pltpu.MemorySpace.VMEM)
        out_p = pl.pallas_call(
            gcn_fused_kernel,
            out_shape=jax.ShapeDtypeStruct((n_pad, o_pad), jnp.float32),
            in_specs=[vmem] * 6,
            out_specs=vmem,
            cost_estimate=pl.CostEstimate(
                flops=int(2 * (n_pad * f_pad * h_pad + n_pad * n_pad * h_pad
                               + n_pad * h_pad * o_pad + n_pad * n_pad * o_pad)),
                transcendentals=int(n_pad * h_pad),
                bytes_accessed=int(2 * n_pad * n_pad + 2 * n_pad * f_pad
                                   + 4 * n_pad * o_pad),
            ),
        )(a_p, x_p, w1_p, b1_p, w2_p, b2_p)
    else:
        # Tiled path (scales past VMEM; shards row tiles across v7x cores):
        #   z1  = X @ W1                        (row-tiled matmul)
        #   z2  = ELU(A @ z1 + b1) @ W2         (aggregation + fused projection)
        #   out = A @ z2 + b2                   (aggregation)
        z1 = _xw_tiled(x_p, w1_p, jnp.bfloat16)
        z2 = _agg_tiled(a_p, z1, b1_p, w2_p, apply_elu=True,
                        out_dtype=jnp.bfloat16)
        out_p = _agg_tiled(a_p, z2, b2_p, None, apply_elu=False,
                           out_dtype=jnp.float32)

    return out_p[:n, :out_feats]


# ---------------------------------------------------------------------------
# Pure-JAX reference (f32) for validation
# ---------------------------------------------------------------------------
def gcn_reference(x, edge_index, params, edge_weight=None):
    a = build_norm_adj(edge_index, edge_weight, x.shape[0])
    w1, b1, w2, b2 = params
    h1 = a @ (x.astype(jnp.float32) @ w1) + b1.reshape(1, -1)
    h1 = jnp.where(h1 > 0, h1, jnp.expm1(h1))
    return a @ (h1 @ w2) + b2.reshape(1, -1)


# ---------------------------------------------------------------------------
# Deterministic parameter init (Glorot-uniform weights, zero bias)
# ---------------------------------------------------------------------------
def init_params(key, in_feats, h_feats, out_feats):
    k1, k2 = jax.random.split(key)

    def glorot(k, fan_in, fan_out):
        lim = jnp.sqrt(6.0 / (fan_in + fan_out))
        return jax.random.uniform(k, (fan_in, fan_out), jnp.float32, -lim, lim)

    w1 = glorot(k1, in_feats, h_feats)
    b1 = jnp.zeros((1, h_feats), jnp.float32)
    w2 = glorot(k2, h_feats, out_feats)
    b2 = jnp.zeros((1, out_feats), jnp.float32)
    return (w1, b1, w2, b2)


if __name__ == "__main__":
    IN_FEATS, H_FEATS, OUT_FEATS = 8, 32, 4
    key = jax.random.PRNGKey(0)
    kx, ke, kp, kx2, ke2 = jax.random.split(key, 5)
    params = init_params(kp, IN_FEATS, H_FEATS, OUT_FEATS)

    # --- small graph: fully-fused VMEM-resident kernel ---
    N, E = 16, 40
    x = jax.random.normal(kx, (N, IN_FEATS), jnp.float32)
    edge_index = jax.random.randint(ke, (2, E), 0, N, dtype=jnp.int32)

    out = gcn_forward(x, edge_index, params, edge_weight=None)
    out = jax.block_until_ready(out)
    assert out.shape == (N, OUT_FEATS)
    ref = gcn_reference(x, edge_index, params)
    assert jnp.allclose(out, ref, atol=1e-1, rtol=1e-1), "fused path mismatch"

    # --- larger graph: exercise the tiled three-call path (multi-tile grid) ---
    N2, E2 = 300, 900
    x2 = jax.random.normal(kx2, (N2, IN_FEATS), jnp.float32)
    edge_index2 = jax.random.randint(ke2, (2, E2), 0, N2, dtype=jnp.int32)

    out2 = gcn_forward(x2, edge_index2, params, edge_weight=None,
                       force_tiled=True)
    out2 = jax.block_until_ready(out2)
    assert out2.shape == (N2, OUT_FEATS)
    ref2 = gcn_reference(x2, edge_index2, params)
    assert jnp.allclose(out2, ref2, atol=1e-1, rtol=1e-1), "tiled path mismatch"

    print("KERNEL_OK")
</pallas_src>

<mosaic_0001>
module attributes {stable_mosaic.version = 11 : i64} {
  func.func @gcn_fused_kernel(%arg0: memref<128x128xbf16, #tpu.memory_space<vmem>>, %arg1: memref<128x128xbf16, #tpu.memory_space<vmem>>, %arg2: memref<128x128xbf16, #tpu.memory_space<vmem>>, %arg3: memref<1x128xf32, #tpu.memory_space<vmem>>, %arg4: memref<128x128xbf16, #tpu.memory_space<vmem>>, %arg5: memref<1x128xf32, #tpu.memory_space<vmem>>, %arg6: memref<128x128xf32, #tpu.memory_space<vmem>>) attributes {dimension_semantics = [], scalar_prefetch = 0 : i64, scratch_operands = 0 : i64, tpu.core_type = #tpu.core_type<tc>} {
    %c0 = arith.constant 0 : index
    %c0_0 = arith.constant 0 : index
    %0 = vector.load %arg0[%c0, %c0_0] : memref<128x128xbf16, #tpu.memory_space<vmem>>, vector<128x128xbf16>
    %c0_1 = arith.constant 0 : index
    %c0_2 = arith.constant 0 : index
    %1 = vector.load %arg1[%c0_1, %c0_2] : memref<128x128xbf16, #tpu.memory_space<vmem>>, vector<128x128xbf16>
    %c0_3 = arith.constant 0 : index
    %c0_4 = arith.constant 0 : index
    %2 = vector.load %arg2[%c0_3, %c0_4] : memref<128x128xbf16, #tpu.memory_space<vmem>>, vector<128x128xbf16>
    %cst = arith.constant dense<0.000000e+00> : vector<128x128xf32>
    %3 = tpu.matmul %1, %2, %cst {dimension_numbers = #tpu.dot_dimension_numbers<[1], [0], [0], [1], [0, 0, 1, 1], [], []>} : vector<128x128xbf16>, vector<128x128xbf16>, vector<128x128xf32> -> vector<128x128xf32>
    %4 = arith.truncf %3 : vector<128x128xf32> to vector<128x128xbf16>
    %cst_5 = arith.constant dense<0.000000e+00> : vector<128x128xf32>
    %5 = tpu.matmul %0, %4, %cst_5 {dimension_numbers = #tpu.dot_dimension_numbers<[1], [0], [0], [1], [0, 0, 1, 1], [], []>} : vector<128x128xbf16>, vector<128x128xbf16>, vector<128x128xf32> -> vector<128x128xf32>
    %c0_6 = arith.constant 0 : index
    %c0_7 = arith.constant 0 : index
    %6 = vector.load %arg3[%c0_6, %c0_7] : memref<1x128xf32, #tpu.memory_space<vmem>>, vector<1x128xf32>
    %7 = vector.broadcast %6 : vector<1x128xf32> to vector<128x128xf32>
    %8 = arith.addf %5, %7 : vector<128x128xf32>
    %cst_8 = arith.constant 0.000000e+00 : f32
    %9 = vector.broadcast %cst_8 : f32 to vector<128x128xf32>
    %10 = arith.cmpf ogt, %8, %9 : vector<128x128xf32>
    %cst_9 = arith.constant 0.000000e+00 : f32
    %11 = vector.broadcast %cst_9 : f32 to vector<128x128xf32>
    %12 = arith.minimumf %8, %11 : vector<128x128xf32>
    %13 = math.exp %12 : vector<128x128xf32>
    %cst_10 = arith.constant 1.000000e+00 : f32
    %14 = vector.broadcast %cst_10 : f32 to vector<128x128xf32>
    %15 = arith.subf %13, %14 : vector<128x128xf32>
    %16 = arith.select %10, %8, %15 : vector<128x128xi1>, vector<128x128xf32>
    %17 = arith.truncf %16 : vector<128x128xf32> to vector<128x128xbf16>
    %c0_11 = arith.constant 0 : index
    %c0_12 = arith.constant 0 : index
    %18 = vector.load %arg4[%c0_11, %c0_12] : memref<128x128xbf16, #tpu.memory_space<vmem>>, vector<128x128xbf16>
    %cst_13 = arith.constant dense<0.000000e+00> : vector<128x128xf32>
    %19 = tpu.matmul %17, %18, %cst_13 {dimension_numbers = #tpu.dot_dimension_numbers<[1], [0], [0], [1], [0, 0, 1, 1], [], []>} : vector<128x128xbf16>, vector<128x128xbf16>, vector<128x128xf32> -> vector<128x128xf32>
    %20 = arith.truncf %19 : vector<128x128xf32> to vector<128x128xbf16>
    %cst_14 = arith.constant dense<0.000000e+00> : vector<128x128xf32>
    %21 = tpu.matmul %0, %20, %cst_14 {dimension_numbers = #tpu.dot_dimension_numbers<[1], [0], [0], [1], [0, 0, 1, 1], [], []>} : vector<128x128xbf16>, vector<128x128xbf16>, vector<128x128xf32> -> vector<128x128xf32>
    %c0_15 = arith.constant 0 : index
    %c0_16 = arith.constant 0 : index
    %22 = vector.load %arg5[%c0_15, %c0_16] : memref<1x128xf32, #tpu.memory_space<vmem>>, vector<1x128xf32>
    %23 = vector.broadcast %22 : vector<1x128xf32> to vector<128x128xf32>
    %24 = arith.addf %21, %23 : vector<128x128xf32>
    %c0_17 = arith.constant 0 : index
    %c0_18 = arith.constant 0 : index
    %25 = vector.load %arg6[%c0_17, %c0_18] : memref<128x128xf32, #tpu.memory_space<vmem>>, vector<128x128xf32>
    tpu.vector_store %arg6[%c0_17, %c0_18], %24 {strides = array<i32>} : memref<128x128xf32, #tpu.memory_space<vmem>>, vector<128x128xf32>,
    return
  }
}

</mosaic_0001>

<bundles_post_ra>
// kernel: mul.1
= control target key start
LH: loop header
LB: loop body
LE: loop exit
PB: predicated region body
PF: predicated region fallthrough
CT: control target
= control target key end

     0   :  { %s34_s0 = inlined_call_operand.vmem [shape: f32[56], index: 0, kind: input, shape index: {}]   ;;  %s35_s1 = inlined_call_operand.vmem [shape: f32[56], index: 1, kind: input, shape index: {}]   ;;  %s36_s2 = inlined_call_operand.vmem [shape: f32[56], index: 2, kind: output, shape index: {}]  }
   0x1   :  { %v3_v0 = vld [vmem:[%s34_s0] sm:$0x1] }
   0x2   :  { %v4_v1 = vld [vmem:[%s35_s1] sm:$0x1] }
   0x3   :  { %v7_v2 = vmul.f32 %v4_v1, %v3_v0 }
   0x5   :  { %9 = vst [vmem:[%s36_s2] sm:$0x1] %v7_v2 }

// kernel: gcn_forward.1
= control target key start
LH: loop header
LB: loop body
LE: loop exit
PB: predicated region body
PF: predicated region fallthrough
CT: control target
= control target key end

     0   :  { %s1426_s2 = inlined_call_operand.vmem [shape: bf16[128,128], index: 2, kind: input, shape index: {}]   ;;  %s1427_s1 = inlined_call_operand.vmem [shape: bf16[128,128], index: 1, kind: input, shape index: {}]   ;;  %s1428_s0 = inlined_call_operand.vmem [shape: bf16[128,128], index: 0, kind: input, shape index: {}]   ;;  %s1429_s4 = inlined_call_operand.vmem [shape: bf16[128,128], index: 4, kind: input, shape index: {}]   ;;  %s1430_s3 = inlined_call_operand.vmem [shape: f32[1,128], index: 3, kind: input, shape index: {}]   ;;  %s1431_s5 = inlined_call_operand.vmem [shape: f32[1,128], index: 5, kind: input, shape index: {}]   ;;  %s1432_s6 = inlined_call_operand.vmem [shape: f32[128,128], index: 6, kind: output, shape index: {}]  }
   0x1   :  { %v1064_v0 = vld [vmem:[%s1426_s2] sm:$0xff]   ;;  %v1065_v1 = vld [vmem:[%s1426_s2 + $0x8] sm:$0xff]   ;;  %v1066_v2 = vld [vmem:[%s1426_s2 + $0x10] sm:$0xff]  }
   0x2   :  { %936 = vmatprep.subr.bf16.mxu0 %v1064_v0  ;;  %v1067_v3 = vld [vmem:[%s1426_s2 + $0x18] sm:$0xff]   ;;  %v1072_v4 = vld [vmem:[%s1427_s1] sm:$0xff]   ;;  %v1069_v6 = vld [vmem:[%s1426_s2 + $0x28] sm:$0xff]  }
   0x3   :  { %937 = vmatpush3.bf16.msra.mxu0 %v1064_v0  ;;  %952 = vmatprep.mubr.bf16.mxu0 %v1072_v4  ;;  %v1068_v5 = vld [vmem:[%s1426_s2 + $0x20] sm:$0xff]   ;;  %v1070_v7 = vld [vmem:[%s1426_s2 + $0x30] sm:$0xff]   ;;  %v1071_v8 = vld [vmem:[%s1426_s2 + $0x38] sm:$0xff]  }
   0x4   :  { %938 = vmatprep.subr.bf16.mxu0 %v1065_v1  ;;  %v1073_v9 = vld [vmem:[%s1427_s1 + $0x8] sm:$0xff]   ;;  %v1074_v10 = vld [vmem:[%s1427_s1 + $0x10] sm:$0xff]   ;;  %v1075_v11 = vld [vmem:[%s1427_s1 + $0x18] sm:$0xff]  }
   0x5   :  { %v1076_v12 = vld [vmem:[%s1427_s1 + $0x20] sm:$0xff]   ;;  %v1077_v13 = vld [vmem:[%s1427_s1 + $0x28] sm:$0xff]   ;;  %v1078_v14 = vld [vmem:[%s1427_s1 + $0x30] sm:$0xff]  }
   0x6   :  { %v1079_v15 = vld [vmem:[%s1427_s1 + $0x38] sm:$0xff]   ;;  %v1080_v16 = vld [vmem:[%s1428_s0] sm:$0xff]   ;;  %v1089_v18 = vld [vmem:[%s1429_s4 + $0x8] sm:$0xff]  }
   0x7   :  { %939 = vmatpush3.bf16.msra.mxu0 %v1065_v1  ;;  %984 = vmatprep.mubr.bf16.mxu1 %v1080_v16  ;;  %v1088_v17 = vld [vmem:[%s1429_s4] sm:$0xff]   ;;  %v1223_v43 = vld [vmem:[%s1428_s0 + $0x8] sm:$0xff]   ;;  %v1228_v44 = vld [vmem:[%s1428_s0 + $0x10] sm:$0xff]  }
   0x8   :  { %940 = vmatprep.subr.bf16.mxu0 %v1066_v2  ;;  %v1235_v45 = vld [vmem:[%s1428_s0 + $0x18] sm:$0xff]   ;;  %v1240_v46 = vld [vmem:[%s1428_s0 + $0x20] sm:$0xff]   ;;  %v1247_v47 = vld [vmem:[%s1428_s0 + $0x28] sm:$0xff]  }
   0x9   :  { %v1252_v48 = vld [vmem:[%s1428_s0 + $0x30] sm:$0xff]   ;;  %v1259_v49 = vld [vmem:[%s1428_s0 + $0x38] sm:$0xff]   ;;  %v1092_v52 = vld [vmem:[%s1429_s4 + $0x20] sm:$0xff]  }
   0xa   :  { %v1090_v50 = vld [vmem:[%s1429_s4 + $0x10] sm:$0xff]   ;;  %v1091_v51 = vld [vmem:[%s1429_s4 + $0x18] sm:$0xff]   ;;  %v1093_v53 = vld [vmem:[%s1429_s4 + $0x28] sm:$0xff]  }
   0xb   :  { %941 = vmatpush3.bf16.msra.mxu0 %v1066_v2  ;;  %v1094_v54 = vld [vmem:[%s1429_s4 + $0x30] sm:$0xff]   ;;  %v1095_v55 = vld [vmem:[%s1429_s4 + $0x38] sm:$0xff]   ;;  %v1283_v56 = vld [vmem:[%s1430_s3] ss:$0 sm:$0xff] }
   0xc   :  { %942 = vmatprep.subr.bf16.mxu0 %v1067_v3 }
   0xf   :  { %943 = vmatpush3.bf16.msra.mxu0 %v1067_v3 }
  0x10   :  { %944 = vmatprep.subr.bf16.mxu0 %v1068_v5 }
  0x13   :  { %945 = vmatpush3.bf16.msra.mxu0 %v1068_v5 }
  0x14   :  { %946 = vmatprep.subr.bf16.mxu0 %v1069_v6 }
  0x17   :  { %947 = vmatpush3.bf16.msra.mxu0 %v1069_v6 }
  0x18   :  { %948 = vmatprep.subr.bf16.mxu0 %v1070_v7 }
  0x1b   :  { %949 = vmatpush3.bf16.msra.mxu0 %v1070_v7 }
  0x1c   :  { %950 = vmatprep.subr.bf16.mxu0 %v1071_v8 }
  0x1f   :  { %951 = vmatpush3.bf16.msra.mxu0 %v1071_v8 }
  0x20   :  { %1000 = vmatprep.subr.bf16.mxu0 %v1088_v17 }
  0x22   :  { %953 = vmatmul.mubr.bf16.vlgmr.msra.gmra.mrb[0].mxu0 %v1073_v9 }
  0x23   :  { %956 = vmatprep.mubr.bf16.mxu0 %v1074_v10  ;;  %1001 = vmatpush3.bf16.msra.mxu0 %v1088_v17 }
  0x24   :  { %1002 = vmatprep.subr.bf16.mxu0 %v1089_v18 }
  0x27   :  { %1003 = vmatpush3.bf16.msra.mxu0 %v1089_v18 }
  0x28   :  { %1004 = vmatprep.subr.bf16.mxu0 %v1090_v50 }
  0x2a   :  { %957 = vmatmul.mubr.bf16.gmra.mrb[4].mxu0 %v1075_v11 }
  0x2b   :  { %960 = vmatprep.mubr.bf16.mxu0 %v1076_v12  ;;  %1005 = vmatpush3.bf16.msra.mxu0 %v1090_v50 }
  0x2c   :  { %1006 = vmatprep.subr.bf16.mxu0 %v1091_v51 }
  0x2f   :  { %1007 = vmatpush3.bf16.msra.mxu0 %v1091_v51 }
  0x30   :  { %1008 = vmatprep.subr.bf16.mxu0 %v1092_v52 }
  0x32   :  { %961 = vmatmul.mubr.bf16.gmra.mrb[8].mxu0 %v1077_v13 }
  0x33   :  { %964 = vmatprep.mubr.bf16.mxu0 %v1078_v14  ;;  %1009 = vmatpush3.bf16.msra.mxu0 %v1092_v52 }
  0x34   :  { %1010 = vmatprep.subr.bf16.mxu0 %v1093_v53 }
  0x37   :  { %1011 = vmatpush3.bf16.msra.mxu0 %v1093_v53 }
  0x38   :  { %1012 = vmatprep.subr.bf16.mxu0 %v1094_v54 }
  0x3a   :  { %965 = vmatmul.mubr.bf16.gmra.mrb[12].mxu0 %v1079_v15 }
  0x3b   :  { %1013 = vmatpush3.bf16.msra.mxu0 %v1094_v54 }
  0x3c   :  { %1014 = vmatprep.subr.bf16.mxu0 %v1095_v55 }
  0x3f   :  { %1015 = vmatpush3.bf16.msra.mxu0 %v1095_v55 }
  0xf5   :  { %v954_v19 = vpop.f32.mrb[0].mxu0 }
  0xf6   :  { %v202_v20 = vpop.f32.mrb[1].mxu0 }
  0xf7   :  { %v955_v21 = vpop.f32.mrb[2].mxu0 }
  0xf8   :  { %v266_v22 = vpack.c.bf16 %v955_v21, %v954_v19  ;;  %v205_v23 = vpop.f32.mrb[3].mxu0 }
  0xf9   :  { %v265_v24 = vpack.c.bf16 %v205_v23, %v202_v20 }
  0xfb   :  { %968 = vmatprep.subr.bf16.mxu1 %v265_v24 }
  0xfc   :  { %969 = vmatpush3.bf16.msra.mxu1 %v265_v24 }
  0xfd   :  { %v958_v25 = vpop.f32.mrb[4].mxu0  ;;  %970 = vmatprep.subr.bf16.mxu1 %v266_v22 }
  0xfe   :  { %v218_v26 = vpop.f32.mrb[5].mxu0 }
  0xff   :  { %v959_v27 = vpop.f32.mrb[6].mxu0 }
 0x100   :  { %v268_v28 = vpack.c.bf16 %v959_v27, %v958_v25  ;;  %v221_v29 = vpop.f32.mrb[7].mxu0  ;;  %971 = vmatpush3.bf16.msra.mxu1 %v266_v22 }
 0x101   :  { %v267_v30 = vpack.c.bf16 %v221_v29, %v218_v26 }
 0x103   :  { %972 = vmatprep.subr.bf16.mxu1 %v267_v30 }
 0x104   :  { %973 = vmatpush3.bf16.msra.mxu1 %v267_v30 }
 0x105   :  { %v962_v31 = vpop.f32.mrb[8].mxu0  ;;  %974 = vmatprep.subr.bf16.mxu1 %v268_v28 }
 0x106   :  { %v234_v32 = vpop.f32.mrb[9].mxu0 }
 0x107   :  { %v963_v33 = vpop.f32.mrb[10].mxu0 }
 0x108   :  { %v270_v34 = vpack.c.bf16 %v963_v33, %v962_v31  ;;  %v237_v35 = vpop.f32.mrb[11].mxu0  ;;  %975 = vmatpush3.bf16.msra.mxu1 %v268_v28 }
 0x109   :  { %v269_v36 = vpack.c.bf16 %v237_v35, %v234_v32 }
 0x10b   :  { %976 = vmatprep.subr.bf16.mxu1 %v269_v36 }
 0x10c   :  { %977 = vmatpush3.bf16.msra.mxu1 %v269_v36 }
 0x10d   :  { %v966_v37 = vpop.f32.mrb[12].mxu0  ;;  %978 = vmatprep.subr.bf16.mxu1 %v270_v34 }
 0x10e   :  { %v250_v38 = vpop.f32.mrb[13].mxu0 }
 0x10f   :  { %v967_v39 = vpop.f32.mrb[14].mxu0 }
 0x110   :  { %v272_v40 = vpack.c.bf16 %v967_v39, %v966_v37  ;;  %v253_v41 = vpop.f32.mrb[15].mxu0  ;;  %979 = vmatpush3.bf16.msra.mxu1 %v270_v34 }
 0x111   :  { %v271_v42 = vpack.c.bf16 %v253_v41, %v250_v38 }
 0x113   :  { %980 = vmatprep.subr.bf16.mxu1 %v271_v42 }
 0x114   :  { %981 = vmatpush3.bf16.msra.mxu1 %v271_v42 }
 0x115   :  { %982 = vmatprep.subr.bf16.mxu1 %v272_v40 }
 0x118   :  { %983 = vmatpush3.bf16.msra.mxu1 %v272_v40 }
 0x11b   :  { %985 = vmatmul.mubr.bf16.vlgmr.msra.gmra.mrb[0].mxu1 %v1223_v43 }
 0x11c   :  { %988 = vmatprep.mubr.bf16.mxu1 %v1228_v44 }
 0x123   :  { %989 = vmatmul.mubr.bf16.gmra.mrb[4].mxu1 %v1235_v45 }
 0x124   :  { %992 = vmatprep.mubr.bf16.mxu1 %v1240_v46 }
 0x12b   :  { %993 = vmatmul.mubr.bf16.gmra.mrb[8].mxu1 %v1247_v47 }
 0x12c   :  { %996 = vmatprep.mubr.bf16.mxu1 %v1252_v48 }
 0x133   :  { %997 = vmatmul.mubr.bf16.gmra.mrb[12].mxu1 %v1259_v49 }
 0x134   :  { %1048 = vmatprep.mubr.bf16.mxu1 %v1080_v16 }
 0x1ee   :  { %v986_v57 = vpop.f32.mrb[0].mxu1 }
 0x1ef   :  { %v371_v58 = vadd.f32 %v986_v57, %v1283_v56  ;;  %v362_v59 = vpop.f32.mrb[1].mxu1 }
 0x1f0   :  { %v1287_v60 = vadd.f32 %v1283_v56, %v362_v59  ;;  %v987_v61 = vpop.f32.mrb[2].mxu1 }
 0x1f1   :  { %v443_v62 = vmin.f32 %v371_v58, 0.0  ;;  %v374_v63 = vadd.f32 %v987_v61, %v1283_v56  ;;  %v365_v0 = vpop.f32.mrb[3].mxu1  ;;  %vm427_vm0 = vcmp.gt.f32.partialorder %v371_v58, 0.0 }
 0x1f2   :  { %v441_v1 = vmin.f32 %v1287_v60, 0.0  ;;  %v1292_v2 = vadd.f32 %v1283_v56, %v365_v0  ;;  %vm425_vm1 = vcmp.gt.f32.partialorder %v1287_v60, 0.0 }
 0x1f3   :  { %v461_v3 = vmul.f32 1.442695, %v443_v62  ;;  %v444_v4 = vmin.f32 %v374_v63, 0.0  ;;  %vm428_vm2 = vcmp.gt.f32.partialorder %v374_v63, 0.0 }
 0x1f4   :  { %v457_v5 = vmul.f32 1.442695, %v441_v1  ;;  %v442_v6 = vmin.f32 %v1292_v2, 0.0  ;;  %vm426_vm3 = vcmp.gt.f32.partialorder %v1292_v2, 0.0 }
 0x1f5   :  { %1096 = vpow2.f32 %v461_v3  ;;  %v463_v7 = vmul.f32 1.442695, %v444_v4 }
 0x1f6   :  { %1098 = vpow2.f32 %v457_v5  ;;  %v459_v8 = vmul.f32 1.442695, %v442_v6  ;;  %v990_v9 = vpop.f32.mrb[4].mxu1 }
 0x1f7   :  { %1100 = vpow2.f32 %v463_v7  ;;  %v1296_v10 = vadd.f32 %v990_v9, %v1283_v56  ;;  %v378_v11 = vpop.f32.mrb[5].mxu1 }
 0x1f8   :  { %1102 = vpow2.f32 %v459_v8  ;;  %v1299_v12 = vadd.f32 %v1283_v56, %v378_v11  ;;  %v991_v13 = vpop.f32.mrb[6].mxu1 }
 0x1f9   :  { %v447_v14 = vmin.f32 %v1296_v10, 0.0  ;;  %v1303_v15 = vadd.f32 %v991_v13, %v1283_v56  ;;  %v381_v16 = vpop.f32.mrb[7].mxu1  ;;  %vm431_vm4 = vcmp.gt.f32.partialorder %v1296_v10, 0.0 }
 0x1fa   :  { %v445_v17 = vmin.f32 %v1299_v12, 0.0  ;;  %v1307_v18 = vadd.f32 %v1283_v56, %v381_v16  ;;  %vm429_vm5 = vcmp.gt.f32.partialorder %v1299_v12, 0.0 }
 0x1fb   :  { %v469_v19 = vmul.f32 1.442695, %v447_v14  ;;  %v448_v20 = vmin.f32 %v1303_v15, 0.0  ;;  %vm432_vm6 = vcmp.gt.f32.partialorder %v1303_v15, 0.0 }
 0x1fc   :  { %v465_v21 = vmul.f32 1.442695, %v445_v17  ;;  %v446_v22 = vmin.f32 %v1307_v18, 0.0  ;;  %vm430_vm7 = vcmp.gt.f32.partialorder %v1307_v18, 0.0 }
 0x1fd   :  { %1104 = vpow2.f32 %v469_v19  ;;  %v471_v23 = vmul.f32 1.442695, %v448_v20 }
 0x1fe   :  { %1106 = vpow2.f32 %v465_v21  ;;  %v467_v24 = vmul.f32 1.442695, %v446_v22  ;;  %v994_v25 = vpop.f32.mrb[8].mxu1 }
 0x1ff   :  { %v1097_v26 = vpop.eup %1096  ;;  %1108 = vpow2.f32 %v471_v23  ;;  %v1312_v27 = vadd.f32 %v994_v25, %v1283_v56  ;;  %v394_v28 = vpop.f32.mrb[9].mxu1 }
 0x200   :  { %v1099_v29 = vpop.eup %1098  ;;  %v849_v30 = vadd.f32 -1.0, %v1097_v26  ;;  %1110 = vpow2.f32 %v467_v24  ;;  %v1315_v31 = vadd.f32 %v1283_v56, %v394_v28  ;;  %v995_v32 = vpop.f32.mrb[10].mxu1 }
 0x201   :  { %v1101_v33 = vpop.eup %1100  ;;  %v847_v34 = vadd.f32 -1.0, %v1099_v29  ;;  %v451_v35 = vmin.f32 %v1312_v27, 0.0  ;;  %v1320_v36 = vadd.f32 %v995_v32, %v1283_v56  ;;  %v397_v37 = vpop.f32.mrb[11].mxu1  ;;  %vm435_vm8 = vcmp.gt.f32.partialorder %v1312_v27, 0.0 }
 0x202   :  { %v1103_v38 = vpop.eup %1102  ;;  %v850_v39 = vadd.f32 -1.0, %v1101_v33  ;;  %v449_v40 = vmin.f32 %v1315_v31, 0.0  ;;  %v507_v41 = vsel %vm427_vm0, %v371_v58, %v849_v30  ;;  %v1327_v54 = vadd.f32 %v1283_v56, %v397_v37 }
 0x203   :  { %v848_v42 = vadd.f32 -1.0, %v1103_v38  ;;  %v477_v50 = vmul.f32 1.442695, %v451_v35  ;;  %v452_v51 = vmin.f32 %v1320_v36, 0.0  ;;  %v505_v55 = vsel %vm425_vm1, %v1287_v60, %v847_v34 }
 0x204   :  { %v508_v52 = vsel %vm428_vm2, %v374_v63, %v850_v39  ;;  %v473_v53 = vmul.f32 1.442695, %v449_v40  ;;  %v450_v58 = vmin.f32 %v1327_v54, 0.0  ;;  %vm436_vm9 = vcmp.gt.f32.partialorder %v1320_v36, 0.0 }
 0x205   :  { %v522_v57 = vpack.c.bf16 %v508_v52, %v507_v41  ;;  %1112 = vpow2.f32 %v477_v50  ;;  %v479_v59 = vmul.f32 1.442695, %v452_v51  ;;  %v506_v61 = vsel %vm426_vm3, %v1292_v2, %v848_v42 }
 0x206   :  { %1114 = vpow2.f32 %v473_v53  ;;  %v998_v62 = vpop.f32.mrb[12].mxu1  ;;  %v521_v0 = vpack.c.bf16 %v506_v61, %v505_v55  ;;  %v475_v60 = vmul.f32 1.442695, %v450_v58  ;;  %vm433_vm10 = vcmp.gt.f32.partialorder %v1315_v31, 0.0 }
 0x207   :  { %v1105_v1 = vpop.eup %1104  ;;  %1116 = vpow2.f32 %v479_v59  ;;  %v1335_v63 = vadd.f32 %v998_v62, %v1283_v56  ;;  %v410_v3 = vpop.f32.mrb[13].mxu1  ;;  %vm434_vm11 = vcmp.gt.f32.partialorder %v1327_v54, 0.0 }
 0x208   :  { %v1107_v4 = vpop.eup %1106  ;;  %v1339_v5 = vadd.f32 %v1283_v56, %v410_v3  ;;  %v999_v6 = vpop.f32.mrb[14].mxu1  ;;  %1016 = vmatprep.mubr.bf16.mxu0 %v521_v0  ;;  %v853_v14 = vadd.f32 -1.0, %v1105_v1  ;;  %1118 = vpow2.f32 %v475_v60 }
 0x209   :  { %v1109_v2 = vpop.eup %1108  ;;  %v851_v7 = vadd.f32 -1.0, %v1107_v4  ;;  %v455_v8 = vmin.f32 %v1335_v63, 0.0  ;;  %v422_v9 = vadd.f32 %v999_v6, %v1283_v56  ;;  %v413_v11 = vpop.f32.mrb[15].mxu1  ;;  %1017 = vmatmul.mubr.bf16.vlgmr.msra.gmra.mrb[16].mxu0 %v522_v57  ;;  %vm439_vm12 = vcmp.gt.f32.partialorder %v1335_v63, 0.0 }
 0x20a   :  { %v1111_v13 = vpop.eup %1110  ;;  %v854_v16 = vadd.f32 -1.0, %v1109_v2  ;;  %v453_v17 = vmin.f32 %v1339_v5, 0.0  ;;  %v414_v23 = vadd.f32 %v1283_v56, %v413_v11  ;;  %v511_v32 = vsel %vm431_vm4, %v1296_v10, %v853_v14 }
 0x20b   :  { %v852_v19 = vadd.f32 -1.0, %v1111_v13  ;;  %v485_v20 = vmul.f32 1.442695, %v455_v8  ;;  %v456_v21 = vmin.f32 %v422_v9, 0.0  ;;  %v509_v24 = vsel %vm429_vm5, %v1299_v12, %v851_v7 }
 0x20c   :  { %v481_v22 = vmul.f32 1.442695, %v453_v17  ;;  %v512_v28 = vsel %vm432_vm6, %v1303_v15, %v854_v16  ;;  %v454_v29 = vmin.f32 %v414_v23, 0.0  ;;  %vm440_vm13 = vcmp.gt.f32.partialorder %v422_v9, 0.0 }
 0x20d   :  { %1120 = vpow2.f32 %v485_v20  ;;  %v487_v25 = vmul.f32 1.442695, %v456_v21  ;;  %v510_v26 = vsel %vm430_vm7, %v1307_v18, %v852_v19  ;;  %v524_v56 = vpack.c.bf16 %v512_v28, %v511_v32 }
 0x20e   :  { %1122 = vpow2.f32 %v481_v22  ;;  %v523_v30 = vpack.c.bf16 %v510_v26, %v509_v24  ;;  %v483_v37 = vmul.f32 1.442695, %v454_v29  ;;  %vm437_vm14 = vcmp.gt.f32.partialorder %v1339_v5, 0.0  ;;  %v871_v29 = vld [vmem:[%s1431_s5] ss:$0 sm:$0xff] }
 0x20f   :  { %v1113_v33 = vpop.eup %1112  ;;  %1124 = vpow2.f32 %v487_v25  ;;  %vm438_vm15 = vcmp.gt.f32.partialorder %v414_v23, 0.0 }
 0x210   :  { %v1115_v34 = vpop.eup %1114  ;;  %v857_v35 = vadd.f32 -1.0, %v1113_v33  ;;  %1020 = vmatprep.mubr.bf16.mxu0 %v523_v30  ;;  %1126 = vpow2.f32 %v483_v37 }
 0x211   :  { %v1117_v12 = vpop.eup %1116  ;;  %1021 = vmatmul.mubr.bf16.gmra.mrb[20].mxu0 %v524_v56  ;;  %v855_v15 = vadd.f32 -1.0, %v1115_v34 }
 0x212   :  { %v858_v38 = vadd.f32 -1.0, %v1117_v12  ;;  %v1119_v18 = vpop.eup %1118  ;;  %v515_v39 = vsel %vm435_vm8, %v1312_v27, %v857_v35 }
 0x213   :  { %v856_v40 = vadd.f32 -1.0, %v1119_v18  ;;  %v513_v50 = vsel %vm433_vm10, %v1315_v31, %v855_v15 }
 0x214   :  { %v516_v10 = vsel %vm436_vm9, %v1320_v36, %v858_v38 }
 0x215   :  { %v526_v41 = vpack.c.bf16 %v516_v10, %v515_v39  ;;  %v514_v51 = vsel %vm434_vm11, %v1327_v54, %v856_v40 }
 0x216   :  { %v525_v55 = vpack.c.bf16 %v514_v51, %v513_v50 }
 0x217   :  { %v1121_v42 = vpop.eup %1120 }
 0x218   :  { %v1123_v52 = vpop.eup %1122  ;;  %v861_v53 = vadd.f32 -1.0, %v1121_v42  ;;  %1024 = vmatprep.mubr.bf16.mxu0 %v525_v55 }
 0x219   :  { %v1125_v57 = vpop.eup %1124  ;;  %v859_v27 = vadd.f32 -1.0, %v1123_v52  ;;  %1025 = vmatmul.mubr.bf16.gmra.mrb[24].mxu0 %v526_v41 }
 0x21a   :  { %v862_v59 = vadd.f32 -1.0, %v1125_v57  ;;  %v1127_v36 = vpop.eup %1126  ;;  %v519_v61 = vsel %vm439_vm12, %v1335_v63, %v861_v53 }
 0x21b   :  { %v860_v62 = vadd.f32 -1.0, %v1127_v36  ;;  %v517_v31 = vsel %vm437_vm14, %v1339_v5, %v859_v27 }
 0x21c   :  { %v520_v58 = vsel %vm440_vm13, %v422_v9, %v862_v59 }
 0x21d   :  { %v528_v0 = vpack.c.bf16 %v520_v58, %v519_v61  ;;  %v518_v54 = vsel %vm438_vm15, %v414_v23, %v860_v62 }
 0x21e   :  { %v527_v1 = vpack.c.bf16 %v518_v54, %v517_v31 }
 0x220   :  { %1028 = vmatprep.mubr.bf16.mxu0 %v527_v1 }
 0x221   :  { %1029 = vmatmul.mubr.bf16.gmra.mrb[28].mxu0 %v528_v0 }
 0x2dc   :  { %v1018_v3 = vpop.f32.mrb[16].mxu0 }
 0x2dd   :  { %v627_v4 = vpop.f32.mrb[17].mxu0 }
 0x2de   :  { %v1019_v60 = vpop.f32.mrb[18].mxu0 }
 0x2df   :  { %v691_v6 = vpack.c.bf16 %v1019_v60, %v1018_v3  ;;  %v630_v2 = vpop.f32.mrb[19].mxu0 }
 0x2e0   :  { %v690_v7 = vpack.c.bf16 %v630_v2, %v627_v4 }
 0x2e2   :  { %1032 = vmatprep.subr.bf16.mxu1 %v690_v7 }
 0x2e3   :  { %1033 = vmatpush3.bf16.msra.mxu1 %v690_v7 }
 0x2e4   :  { %v1022_v63 = vpop.f32.mrb[20].mxu0  ;;  %1034 = vmatprep.subr.bf16.mxu1 %v691_v6 }
 0x2e5   :  { %v643_v8 = vpop.f32.mrb[21].mxu0 }
 0x2e6   :  { %v1023_v9 = vpop.f32.mrb[22].mxu0 }
 0x2e7   :  { %v693_v11 = vpack.c.bf16 %v1023_v9, %v1022_v63  ;;  %v646_v13 = vpop.f32.mrb[23].mxu0  ;;  %1035 = vmatpush3.bf16.msra.mxu1 %v691_v6 }
 0x2e8   :  { %v692_v5 = vpack.c.bf16 %v646_v13, %v643_v8 }
 0x2ea   :  { %1036 = vmatprep.subr.bf16.mxu1 %v692_v5 }
 0x2eb   :  { %1037 = vmatpush3.bf16.msra.mxu1 %v692_v5 }
 0x2ec   :  { %1038 = vmatprep.subr.bf16.mxu1 %v693_v11  ;;  %v1026_v14 = vpop.f32.mrb[24].mxu0 }
 0x2ed   :  { %v659_v16 = vpop.f32.mrb[25].mxu0 }
 0x2ee   :  { %v1027_v17 = vpop.f32.mrb[26].mxu0 }
 0x2ef   :  { %1039 = vmatpush3.bf16.msra.mxu1 %v693_v11  ;;  %v695_v19 = vpack.c.bf16 %v1027_v17, %v1026_v14  ;;  %v662_v20 = vpop.f32.mrb[27].mxu0 }
 0x2f0   :  { %v694_v21 = vpack.c.bf16 %v662_v20, %v659_v16 }
 0x2f2   :  { %1040 = vmatprep.subr.bf16.mxu1 %v694_v21 }
 0x2f3   :  { %1041 = vmatpush3.bf16.msra.mxu1 %v694_v21 }
 0x2f4   :  { %v1030_v22 = vpop.f32.mrb[28].mxu0  ;;  %1042 = vmatprep.subr.bf16.mxu1 %v695_v19 }
 0x2f5   :  { %v675_v23 = vpop.f32.mrb[29].mxu0 }
 0x2f6   :  { %v1031_v24 = vpop.f32.mrb[30].mxu0 }
 0x2f7   :  { %v697_v25 = vpack.c.bf16 %v1031_v24, %v1030_v22  ;;  %v678_v26 = vpop.f32.mrb[31].mxu0  ;;  %1043 = vmatpush3.bf16.msra.mxu1 %v695_v19 }
 0x2f8   :  { %v696_v28 = vpack.c.bf16 %v678_v26, %v675_v23 }
 0x2fa   :  { %1044 = vmatprep.subr.bf16.mxu1 %v696_v28 }
 0x2fb   :  { %1045 = vmatpush3.bf16.msra.mxu1 %v696_v28 }
 0x2fc   :  { %1046 = vmatprep.subr.bf16.mxu1 %v697_v25 }
 0x2ff   :  { %1047 = vmatpush3.bf16.msra.mxu1 %v697_v25 }
 0x302   :  { %1049 = vmatmul.mubr.bf16.vlgmr.msra.gmra.mrb[16].mxu1 %v1223_v43 }
 0x303   :  { %1052 = vmatprep.mubr.bf16.mxu1 %v1228_v44 }
 0x30a   :  { %1053 = vmatmul.mubr.bf16.gmra.mrb[20].mxu1 %v1235_v45 }
 0x30b   :  { %1056 = vmatprep.mubr.bf16.mxu1 %v1240_v46 }
 0x312   :  { %1057 = vmatmul.mubr.bf16.gmra.mrb[24].mxu1 %v1247_v47 }
 0x313   :  { %1060 = vmatprep.mubr.bf16.mxu1 %v1252_v48 }
 0x31a   :  { %1061 = vmatmul.mubr.bf16.gmra.mrb[28].mxu1 %v1259_v49 }
 0x3d5   :  { %v1050_v30 = vpop.f32.mrb[16].mxu1 }
 0x3d6   :  { %v748_v32 = vadd.f32 %v1050_v30, %v871_v29  ;;  %v739_v33 = vpop.f32.mrb[17].mxu1 }
 0x3d7   :  { %v740_v43 = vadd.f32 %v871_v29, %v739_v33  ;;  %v1051_v56 = vpop.f32.mrb[18].mxu1 }
 0x3d8   :  { %804 = vst [vmem:[%s1432_s6 + $0x10] sm:$0xff] %v748_v32  ;;  %v751_v44 = vadd.f32 %v1051_v56, %v871_v29  ;;  %v742_v45 = vpop.f32.mrb[19].mxu1 }
 0x3d9   :  { %802 = vst [vmem:[%s1432_s6] sm:$0xff] %v740_v43  ;;  %v743_v46 = vadd.f32 %v871_v29, %v742_v45 }
 0x3da   :  { %805 = vst [vmem:[%s1432_s6 + $0x18] sm:$0xff] %v751_v44 }
 0x3db   :  { %803 = vst [vmem:[%s1432_s6 + $0x8] sm:$0xff] %v743_v46 }
 0x3dd   :  { %v1054_v47 = vpop.f32.mrb[20].mxu1 }
 0x3de   :  { %v764_v48 = vadd.f32 %v1054_v47, %v871_v29  ;;  %v755_v49 = vpop.f32.mrb[21].mxu1 }
 0x3df   :  { %v756_v34 = vadd.f32 %v871_v29, %v755_v49  ;;  %v1055_v35 = vpop.f32.mrb[22].mxu1 }
 0x3e0   :  { %808 = vst [vmem:[%s1432_s6 + $0x30] sm:$0xff] %v764_v48  ;;  %v767_v37 = vadd.f32 %v1055_v35, %v871_v29  ;;  %v758_v12 = vpop.f32.mrb[23].mxu1 }
 0x3e1   :  { %806 = vst [vmem:[%s1432_s6 + $0x20] sm:$0xff] %v756_v34  ;;  %v759_v38 = vadd.f32 %v871_v29, %v758_v12 }
 0x3e2   :  { %809 = vst [vmem:[%s1432_s6 + $0x38] sm:$0xff] %v767_v37 }
 0x3e3   :  { %807 = vst [vmem:[%s1432_s6 + $0x28] sm:$0xff] %v759_v38 }
 0x3e5   :  { %v1058_v15 = vpop.f32.mrb[24].mxu1 }
 0x3e6   :  { %v780_v18 = vadd.f32 %v1058_v15, %v871_v29  ;;  %v771_v39 = vpop.f32.mrb[25].mxu1 }
 0x3e7   :  { %v772_v10 = vadd.f32 %v871_v29, %v771_v39  ;;  %v1059_v40 = vpop.f32.mrb[26].mxu1 }
 0x3e8   :  { %812 = vst [vmem:[%s1432_s6 + $0x50] sm:$0xff] %v780_v18  ;;  %v783_v41 = vadd.f32 %v1059_v40, %v871_v29  ;;  %v774_v42 = vpop.f32.mrb[27].mxu1 }
 0x3e9   :  { %810 = vst [vmem:[%s1432_s6 + $0x40] sm:$0xff] %v772_v10  ;;  %v775_v50 = vadd.f32 %v871_v29, %v774_v42 }
 0x3ea   :  { %813 = vst [vmem:[%s1432_s6 + $0x58] sm:$0xff] %v783_v41 }
 0x3eb   :  { %811 = vst [vmem:[%s1432_s6 + $0x48] sm:$0xff] %v775_v50 }
 0x3ed   :  { %v1062_v51 = vpop.f32.mrb[28].mxu1 }
 0x3ee   :  { %v796_v52 = vadd.f32 %v1062_v51, %v871_v29  ;;  %v787_v53 = vpop.f32.mrb[29].mxu1 }
 0x3ef   :  { %v788_v55 = vadd.f32 %v871_v29, %v787_v53  ;;  %v1063_v57 = vpop.f32.mrb[30].mxu1 }
 0x3f0   :  { %816 = vst [vmem:[%s1432_s6 + $0x70] sm:$0xff] %v796_v52  ;;  %v799_v59 = vadd.f32 %v1063_v57, %v871_v29  ;;  %v790_v27 = vpop.f32.mrb[31].mxu1 }
 0x3f1   :  { %814 = vst [vmem:[%s1432_s6 + $0x60] sm:$0xff] %v788_v55  ;;  %v791_v36 = vadd.f32 %v871_v29, %v790_v27 }
 0x3f2   :  { %817 = vst [vmem:[%s1432_s6 + $0x78] sm:$0xff] %v799_v59 }
 0x3f3   :  { %815 = vst [vmem:[%s1432_s6 + $0x68] sm:$0xff] %v791_v36 }

</bundles_post_ra>
